<compile_context>
chip_gen: v7x
topology: tpu7x:2x2x1
jax: 0.10.0
libtpu: 0.0.40
codegen_flags: <defaults>
</compile_context>

<pallas_src>
import functools

import jax
import jax.numpy as jnp
from jax.experimental import pallas as pl
from jax.experimental.pallas import tpu as pltpu


# ----------------------------------------------------------------------------
# Small helpers
# ----------------------------------------------------------------------------
def _round_up(n, m):
    return ((n + m - 1) // m) * m


def _sublane(itemsize):
    # Native sublane granularity per element size (f32 -> 8, bf16 -> 16, i8 -> 32).
    return {1: 32, 2: 16}.get(itemsize, 8)


def _vmem_budget():
    """(tile_budget_bytes, vmem_limit_bytes) for the local TPU generation."""
    cap = None
    try:
        cap = int(pltpu.get_tpu_info().vmem_capacity_bytes)
    except Exception:
        cap = None
    if cap is None:
        try:
            kind = jax.devices()[0].device_kind.lower()
        except Exception:
            kind = ""
        if "v5" in kind or "v6" in kind:
            cap = 128 << 20
        else:
            cap = 64 << 20  # conservative (v7x-sized) default
    if cap <= (64 << 20):
        # v7x: 64 MiB physical per TC -> leave headroom for compiler scratch.
        return 40 << 20, 52 << 20
    # v5e / v6e: 128 MiB physical VMEM.
    return 88 << 20, 112 << 20


def _tile_bytes(tb, tm, dt, in_bytes, out_bytes, ktiled):
    """Approximate VMEM working set for one grid step (double-buffered)."""
    b = 2 * (tb * dt + dt * tm) * in_bytes      # x tile + weight tile
    b += 2 * (tb + tm) * 4                      # ||x||^2 and ||w||^2+bias tiles
    b += 2 * tb * tm * out_bytes                # output tile
    if ktiled:
        b += tb * tm * 4                        # f32 accumulator scratch
    return b


def _grow_dim(start, cap, gran, fits):
    """Grow `start` by doubling (rounded to `gran`, clamped to `cap`) while it fits."""
    cur = min(start, cap)
    while cur < cap:
        nxt = min(cap, _round_up(cur * 2, gran))
        if nxt == cur or not fits(nxt):
            break
        cur = nxt
    return cur


def _plan_weight_tiles(M, D, in_bytes, out_bytes, budget, batch_hint):
    """Choose (tm, dt, ktiled) once per weight."""
    sub = _sublane(in_bytes)
    tb_hint = max(sub, min(_round_up(batch_hint, sub),
                           1024 if in_bytes <= 2 else 512))
    tm_cap = _round_up(M, 128)

    if _tile_bytes(sub, 128, D, in_bytes, out_bytes, False) <= budget:
        # Full-D operand tiles fit: one MXU contraction per grid step.
        tm = _grow_dim(
            128, min(tm_cap, 1024), 128,
            lambda t: _tile_bytes(tb_hint, t, D, in_bytes, out_bytes, False)
            <= budget)
        return tm, D, False

    # Very large D: tile the contraction dim (K axis) with an f32 accumulator.
    tm = max(128, (min(tm_cap, 512) // 128) * 128)
    while tm > 128 and _tile_bytes(tb_hint, tm, 128, in_bytes, out_bytes,
                                   True) > budget:
        tm = max(128, ((tm // 2) // 128) * 128)
    dt = _grow_dim(
        128, _round_up(D, 128), 128,
        lambda d: _tile_bytes(tb_hint, tm, d, in_bytes, out_bytes, True)
        <= budget)
    return tm, dt, True


def _plan_batch_tile(B, tm, dt, ktiled, in_bytes, out_bytes, budget):
    sub = _sublane(in_bytes)
    tb_cap = min(_round_up(B, sub), 1024 if in_bytes <= 2 else 512)
    return _grow_dim(
        sub, tb_cap, sub,
        lambda t: _tile_bytes(t, tm, dt, in_bytes, out_bytes, ktiled) <= budget)


def _index_maps(batch_outer, ktiled):
    """(x, w, x2, c, out) index maps for the chosen grid order."""
    if ktiled:
        if batch_outer:
            return (lambda i, j, k: (i, k), lambda i, j, k: (k, j),
                    lambda i, j, k: (i, 0), lambda i, j, k: (0, j),
                    lambda i, j, k: (i, j))
        return (lambda j, i, k: (i, k), lambda j, i, k: (k, j),
                lambda j, i, k: (i, 0), lambda j, i, k: (0, j),
                lambda j, i, k: (i, j))
    if batch_outer:
        return (lambda i, j: (i, 0), lambda i, j: (0, j),
                lambda i, j: (i, 0), lambda i, j: (0, j),
                lambda i, j: (i, j))
    return (lambda j, i: (i, 0), lambda j, i: (0, j),
            lambda j, i: (i, 0), lambda j, i: (0, j),
            lambda j, i: (i, j))


# ----------------------------------------------------------------------------
# Kernels
# ----------------------------------------------------------------------------
def _ncm_kernel(x_ref, w_ref, x2_ref, c_ref, o_ref):
    # x: (tb, D)  w: (D, tm) holding 2*W_eff^T  x2: (tb, 1)  c: (1, tm)
    # out = 2*x.w - ||x||^2 - (||w||^2 + bias)  == -||x - w||^2 - bias
    xw = jnp.dot(x_ref[...], w_ref[...], preferred_element_type=jnp.float32)
    o_ref[...] = (xw - x2_ref[...] - c_ref[...]).astype(o_ref.dtype)


def _ncm_kernel_ktiled(x_ref, w_ref, x2_ref, c_ref, o_ref, acc_ref):
    # Same math, with the contraction dim tiled over the innermost grid axis.
    k = pl.program_id(2)

    @pl.when(k == 0)
    def _():
        acc_ref[...] = jnp.zeros_like(acc_ref)

    acc_ref[...] += jnp.dot(x_ref[...], w_ref[...],
                            preferred_element_type=jnp.float32)

    @pl.when(k == pl.num_programs(2) - 1)
    def _():
        o_ref[...] = (acc_ref[...] - x2_ref[...] - c_ref[...]).astype(o_ref.dtype)


# ----------------------------------------------------------------------------
# pallas_call wrapper
# ----------------------------------------------------------------------------
@functools.partial(
    jax.jit,
    static_argnames=("M", "tb", "tm", "dt", "ktiled", "batch_outer",
                     "vmem_limit"))
def _ncm_apply(x, w2t, c, *, M, tb, tm, dt, ktiled, batch_outer, vmem_limit):
    B, D = x.shape
    D_pad, M_pad = w2t.shape
    B_pad = _round_up(B, tb)

    # ||x||^2 once per call in the wrapper (XLA fuses it while streaming x);
    # removes the in-kernel reduce and the grid-carried scratch.
    x2 = jnp.sum(x.astype(jnp.float32) ** 2, axis=-1, keepdims=True)

    x_in = x.astype(w2t.dtype)
    if B_pad != B or D_pad != D:
        x_in = jnp.pad(x_in, ((0, B_pad - B), (0, D_pad - D)))
    if B_pad != B:
        x2 = jnp.pad(x2, ((0, B_pad - B), (0, 0)))

    nb, nm = B_pad // tb, M_pad // tm
    x_map, w_map, x2_map, c_map, o_map = _index_maps(batch_outer, ktiled)

    if ktiled:
        nk = D_pad // dt
        grid = (nb, nm, nk) if batch_outer else (nm, nb, nk)
        kernel = _ncm_kernel_ktiled
        scratch = [pltpu.VMEM((tb, tm), jnp.float32)]
        semantics = ("parallel", "parallel", "arbitrary")
    else:
        grid = (nb, nm) if batch_outer else (nm, nb)
        kernel = _ncm_kernel
        scratch = []
        semantics = ("parallel", "parallel")

    in_bytes = jnp.dtype(w2t.dtype).itemsize
    out_bytes = jnp.dtype(x.dtype).itemsize
    cost = pl.CostEstimate(
        flops=2 * B_pad * M_pad * D_pad,
        transcendentals=0,
        bytes_accessed=(B_pad * D_pad + D_pad * M_pad) * in_bytes
        + B_pad * M_pad * out_bytes)

    out = pl.pallas_call(
        kernel,
        out_shape=jax.ShapeDtypeStruct((B_pad, M_pad), x.dtype),
        grid_spec=pltpu.PrefetchScalarGridSpec(
            num_scalar_prefetch=0,
            grid=grid,
            in_specs=[
                pl.BlockSpec((tb, dt), x_map),    # x tile
                pl.BlockSpec((dt, tm), w_map),    # 2*W_eff^T tile
                pl.BlockSpec((tb, 1), x2_map),    # ||x||^2
                pl.BlockSpec((1, tm), c_map),     # ||w||^2 + bias
            ],
            out_specs=pl.BlockSpec((tb, tm), o_map),
            scratch_shapes=scratch,
        ),
        compiler_params=pltpu.CompilerParams(
            dimension_semantics=semantics,
            vmem_limit_bytes=vmem_limit,
        ),
        cost_estimate=cost,
    )(x_in, w2t, x2, c)

    return out[:B, :M]


# ----------------------------------------------------------------------------
# Public API
# ----------------------------------------------------------------------------
def make_ncm_head(weight, bias, *, compute_dtype=None, batch_hint=512):
    """One-time weight preprocessing + tile planning for the NCM head.

    Returns apply(x) computing -||x - W_eff||^2 - bias, shape (B, outdim).
    """
    M, D = weight.shape
    compute_dtype = (jnp.dtype(compute_dtype) if compute_dtype is not None
                     else jnp.dtype(weight.dtype))
    in_bytes = compute_dtype.itemsize
    out_bytes = 4  # plan conservatively; actual output dtype follows x
    budget, vmem_limit = _vmem_budget()

    tm, dt, ktiled = _plan_weight_tiles(M, D, in_bytes, out_bytes, budget,
                                        batch_hint)
    M_pad = _round_up(M, tm)
    D_pad = _round_up(D, dt) if ktiled else D

    # ---- one-time weight preprocessing (runs once per weight) ----
    # Reproduce torch's weight.transpose(0,1).reshape(1, -1, indim) exactly:
    # row-major flatten of the transposed view, reshaped to (M, D).
    w_eff = jnp.reshape(weight.T, (M, D))
    # c[m] = ||W_eff[m]||^2 + bias[m]  (f32); padded classes stay exactly 0.
    c = (jnp.sum(w_eff.astype(jnp.float32) ** 2, axis=-1)
         + bias.astype(jnp.float32))
    # Pre-transpose to (D, M) and fold the exact *2 (power-of-two scale) so the
    # kernel epilogue is just xw - ||x||^2 - c.  Zero padding keeps the
    # expanded-distance algebra exact for padded rows/cols.
    w2t = (2.0 * w_eff.astype(jnp.float32)).astype(compute_dtype).T
    w2t = jnp.pad(w2t, ((0, D_pad - D), (0, M_pad - M)))
    c = jnp.pad(c, ((0, M_pad - M),)).reshape(1, M_pad)
    w2t = jax.block_until_ready(w2t)
    c = jax.block_until_ready(c)

    def apply(x):
        assert x.ndim == 2 and x.shape[1] == D, "expected x of shape (B, indim)"
        B = x.shape[0]
        tb = _plan_batch_tile(B, tm, dt, ktiled, in_bytes, out_bytes, budget)
        B_pad = _round_up(B, tb)
        nb, nm = B_pad // tb, M_pad // tm
        # Pick grid order minimizing re-streamed HBM traffic: batch-outer
        # re-reads the weight nb times (x once); class-outer is the mirror.
        cost_bo = B_pad * D_pad + nb * M_pad * D_pad
        cost_co = M_pad * D_pad + nm * B_pad * D_pad
        batch_outer = bool(cost_bo <= cost_co)
        return _ncm_apply(x, w2t, c, M=M, tb=tb, tm=tm, dt=dt, ktiled=ktiled,
                          batch_outer=batch_outer, vmem_limit=vmem_limit)

    return apply


def ncm_output_pallas(x, weight, bias, **kwargs):
    """Convenience wrapper (re-runs the weight prep every call; prefer
    make_ncm_head for a static inference head)."""
    return make_ncm_head(weight, bias, **kwargs)(x)


def ncm_output_ref(x, weight, bias):
    """Pure-JAX reference mirroring the torch forward."""
    B, D = x.shape
    M = weight.shape[0]
    w_eff = jnp.reshape(weight.T, (1, M, D))
    diff = x.reshape(B, 1, D) - w_eff
    nrm = jnp.sqrt(jnp.sum(diff * diff, axis=2))
    return -1.0 * (nrm ** 2) - bias


if __name__ == "__main__":
    key = jax.random.PRNGKey(0)
    B, indim, outdim = 16, 32, 16

    kx, kw, kb = jax.random.split(key, 3)
    x = jax.random.normal(kx, (B, indim), dtype=jnp.float32)

    # Deterministic nn.Linear-style init: U(-1/sqrt(indim), 1/sqrt(indim)).
    bound = 1.0 / (indim ** 0.5)
    weight = jax.random.uniform(kw, (outdim, indim), jnp.float32, -bound, bound)
    bias = jax.random.uniform(kb, (outdim,), jnp.float32, -bound, bound)

    head = make_ncm_head(weight, bias)            # one-time weight prep
    out = jax.block_until_ready(head(x))
    ref = ncm_output_ref(x, weight, bias)

    assert out.shape == (B, outdim)
    max_err = jnp.max(jnp.abs(out - ref))
    assert jnp.allclose(out, ref, atol=1e-3, rtol=1e-3), f"max err {max_err}"
    print("KERNEL_OK")
</pallas_src>

<mosaic_0001>
module attributes {stable_mosaic.version = 11 : i64} {
  func.func @_ncm_kernel(%arg0: i32, %arg1: i32, %arg2: memref<16x32xf32, #tpu.memory_space<vmem>>, %arg3: memref<32x128xf32, #tpu.memory_space<vmem>>, %arg4: memref<16x1xf32, #tpu.memory_space<vmem>>, %arg5: memref<1x128xf32, #tpu.memory_space<vmem>>, %arg6: memref<16x128xf32, #tpu.memory_space<vmem>>) attributes {dimension_semantics = [#tpu.dimension_semantics<parallel>, #tpu.dimension_semantics<parallel>], iteration_bounds = array<i64: 1, 1>, scalar_prefetch = 0 : i64, scratch_operands = 0 : i64, tpu.core_type = #tpu.core_type<tc>, window_params = [{transform_indices = @transform_0, window_bounds = array<i64: 16, 32>}, {transform_indices = @transform_1, window_bounds = array<i64: 32, 128>}, {transform_indices = @transform_2, window_bounds = array<i64: 16, 1>}, {transform_indices = @transform_3, window_bounds = array<i64: 1, 128>}, {transform_indices = @transform_4, window_bounds = array<i64: 16, 128>}]} {
    %c0 = arith.constant 0 : index
    %c0_0 = arith.constant 0 : index
    %0 = vector.load %arg2[%c0, %c0_0] : memref<16x32xf32, #tpu.memory_space<vmem>>, vector<16x32xf32>
    %c0_1 = arith.constant 0 : index
    %c0_2 = arith.constant 0 : index
    %1 = vector.load %arg3[%c0_1, %c0_2] : memref<32x128xf32, #tpu.memory_space<vmem>>, vector<32x128xf32>
    %cst = arith.constant dense<0.000000e+00> : vector<16x128xf32>
    %2 = tpu.matmul %0, %1, %cst {dimension_numbers = #tpu.dot_dimension_numbers<[1], [0], [0], [1], [0, 0, 1, 1], [], []>} : vector<16x32xf32>, vector<32x128xf32>, vector<16x128xf32> -> vector<16x128xf32>
    %c0_3 = arith.constant 0 : index
    %c0_4 = arith.constant 0 : index
    %3 = vector.load %arg4[%c0_3, %c0_4] : memref<16x1xf32, #tpu.memory_space<vmem>>, vector<16x1xf32>
    %4 = vector.broadcast %3 : vector<16x1xf32> to vector<16x128xf32>
    %5 = arith.subf %2, %4 : vector<16x128xf32>
    %c0_5 = arith.constant 0 : index
    %c0_6 = arith.constant 0 : index
    %6 = vector.load %arg5[%c0_5, %c0_6] : memref<1x128xf32, #tpu.memory_space<vmem>>, vector<1x128xf32>
    %7 = vector.broadcast %6 : vector<1x128xf32> to vector<16x128xf32>
    %8 = arith.subf %5, %7 : vector<16x128xf32>
    %c0_7 = arith.constant 0 : index
    %c0_8 = arith.constant 0 : index
    %9 = vector.load %arg6[%c0_7, %c0_8] : memref<16x128xf32, #tpu.memory_space<vmem>>, vector<16x128xf32>
    tpu.vector_store %arg6[%c0_7, %c0_8], %8 {strides = array<i32>} : memref<16x128xf32, #tpu.memory_space<vmem>>, vector<16x128xf32>,
    return
  }
  func.func @transform_0(%arg0: i32, %arg1: i32) -> (i32, i32) {
    %c0_i32 = arith.constant 0 : i32
    %c0_i32_0 = arith.constant 0 : i32
    return %arg0, %c0_i32 : i32, i32
  }
  func.func @transform_1(%arg0: i32, %arg1: i32) -> (i32, i32) {
    %c0_i32 = arith.constant 0 : i32
    %c0_i32_0 = arith.constant 0 : i32
    return %c0_i32, %arg1 : i32, i32
  }
  func.func @transform_2(%arg0: i32, %arg1: i32) -> (i32, i32) {
    %c0_i32 = arith.constant 0 : i32
    %c0_i32_0 = arith.constant 0 : i32
    return %arg0, %c0_i32 : i32, i32
  }
  func.func @transform_3(%arg0: i32, %arg1: i32) -> (i32, i32) {
    %c0_i32 = arith.constant 0 : i32
    %c0_i32_0 = arith.constant 0 : i32
    return %c0_i32, %arg1 : i32, i32
  }
  func.func @transform_4(%arg0: i32, %arg1: i32) -> (i32, i32) {
    %c0_i32 = arith.constant 0 : i32
    return %arg0, %arg1 : i32, i32
  }
}

</mosaic_0001>

<bundles_post_ra>
// kernel: _ncm_apply.1
= control target key start
LH: loop header
LB: loop body
LE: loop exit
PB: predicated region body
PF: predicated region fallthrough
CT: control target
= control target key end

     0   :  { %9 = vsyncpa [#allocation3], 0  ;;  %s321_s0 = inlined_call_operand.vmem [shape: f32[16,32], index: 0, kind: input, shape index: {}]   ;;  %s322_s1 = inlined_call_operand.hbm [shape: f32[32,128], index: 1, kind: input, shape index: {}]   ;;  %s323_s2 = inlined_call_operand.vmem [shape: f32[16,1], index: 2, kind: input, shape index: {}]   ;;  %s324_s3 = inlined_call_operand.vmem [shape: f32[1,128], index: 3, kind: input, shape index: {}]   ;;  %s325_s4 = inlined_call_operand.hbm [shape: f32[16,128], index: 4, kind: output, shape index: {}]  }
   0x1   :  { %10 = vsyncpa [#allocation4], 0  ;;  %s244_s15 = smov [#allocation2]   ;;  %s196_s19 = scalar_lea.hbm %s322_s1, 512 }
   0x2   :  { %s18_s16 = sshll.u32 %s244_s15, 4  ;;  %p197_p0 = scmp.ne.s32.totalorder %s322_s1, %s196_s19  ;;  %s19_s16 = int_to_ptr.vmem [resolvable:$true] %s18_s16 }
   0x3   :  { %p200_p1 = scmp.lt.u32.totalorder %s196_s19, %s322_s1 }
   0x5   :  { %p202_p2 = pnand %p200_p1, %p197_p0 }
   0x7   :  { %205 = shalt.err (!%p202_p2)
}
   0x8   :  { %s206_s24 = scalar_lea.vmem %s19_s16, 512  ;;  %p211_p4 = scmp.lt.s32.totalorder %s19_s16, %s19_s16 }
   0x9   :  { %p207_p3 = scmp.ne.s32.totalorder %s19_s16, %s206_s24  ;;  %p212_p5 = scmp.lt.s32.totalorder %s206_s24, %s206_s24 }
   0xb   :  { %p213_p6 = por %p212_p5, %p211_p4 }
   0xd   :  { %p214_p7 = pnand %p213_p6, %p207_p3 }
   0xf   :  { %217 = shalt.err (!%p214_p7)
}
  0x10   :  { %s245_s25 = smov 128   ;;  %s246_s26 = smov 8  }
  0x11   :  { %24 = dma.hbm_to_vmem [thread:$0]  %s322_s1, 512, %s19_s16, [#allocation3], %s245_s25, %s245_s25, %s246_s26  }
  0x12   :  { %240 = dma.done.wait [#allocation3], 512  }
  0x13   :  { %241 = vsyncadd [#allocation3], 4294966784  ;;  %v247_v0 = vmov 0   ;;  %vm38_vm0 = vcmask 261120   ;;  %v34_v1 = vld [vmem:[#allocation2] sm:$0xff]  ;;  %v35_v2 = vld [vmem:[#allocation2 + $0x8] sm:$0xff] }
  0x14   :  { %195 = vset.pattern.permute.xlu0 %v247_v0  ;;  %v36_v3 = vld [vmem:[#allocation2 + $0x10] sm:$0xff]  ;;  %v182_v4 = vpack.c.bf16 %v35_v2, %v34_v1  ;;  %v37_v5 = vld [vmem:[#allocation2 + $0x18] sm:$0xff]  ;;  %v32_v6 = vld [vmem:[%s321_s0] sm:$0xff]  ;;  %s248_s12 = smov [#allocation5]  }
  0x15   :  { %v186_v7 = vpack.c.bf16 %v37_v5, %v36_v3  ;;  %179 = vmatprep.mubr.msk.f32.mxu0 %vm38_vm0, %v32_v6  ;;  %v120_v8 = vld [vmem:[%s323_s2] sm:$0xff]  ;;  %v121_v9 = vld [vmem:[%s323_s2 + $0x8] sm:$0xff]  ;;  %s150_s2 = sshll.u32 %s248_s12, 4  ;;  %s151_s2 = int_to_ptr.vmem [resolvable:$true] %s150_s2 }
  0x16   :  { %183 = vmatprep.subr.bf16.mxu0 %v182_v4  ;;  %124 = vperm.xlu0 %195, %v120_v8   ;;  %v33_v10 = vld [vmem:[%s321_s0 + $0x8] sm:$0xff]  ;;  %v164_v14 = vld [vmem:[%s324_s3] ss:$0 sm:$0xff]  ;;  %s218_s0 = scalar_lea.vmem %s151_s2, 256  ;;  %p223_p9 = scmp.lt.s32.totalorder %s151_s2, %s151_s2 }
  0x17   :  { %185 = vmatpush3.bf16.msra.mxu0 %v182_v4  ;;  %p219_p8 = scmp.ne.s32.totalorder %s151_s2, %s218_s0  ;;  %p224_p10 = scmp.lt.s32.totalorder %s218_s0, %s218_s0 }
  0x18   :  { %187 = vmatprep.subr.bf16.mxu0 %v186_v7 }
  0x19   :  { %p225_p11 = por %p224_p10, %p223_p9 }
  0x1a   :  { %129 = vperm.xlu0 %195, %v121_v9  }
  0x1b   :  { %189 = vmatpush3.bf16.msra.mxu0 %v186_v7  ;;  %p226_p12 = pnand %p225_p11, %p219_p8 }
  0x1e   :  { %180 = vmatmul.mubr.msk.f32.vlgmr.msra.gmra.mrb[0].mxu0 %vm38_vm0, %v33_v10 }
  0x95   :  { %v125_v11 = vpop.permute.xlu0 %124 }
  0x99   :  { %v130_v12 = vpop.permute.xlu0 %129 }
  0xf1   :  { %v181_v13 = vpop.f32.mrb[0].mxu0 }
  0xf2   :  { %v133_v15 = vsub.f32 %v181_v13, %v130_v12  ;;  %v111_v16 = vpop.f32.mrb[1].mxu0 }
  0xf3   :  { %v132_v17 = vsub.f32 %v111_v16, %v125_v11 }
  0xf4   :  { %v142_v18 = vsub.f32 %v133_v15, %v164_v14 }
  0xf5   :  { %v141_v19 = vsub.f32 %v132_v17, %v164_v14 }
  0xf6   :  { %144 = vst [vmem:[#allocation5 + $0x8] sm:$0xff] %v142_v18 }
  0xf7   :  { %143 = vst [vmem:[#allocation5] sm:$0xff] %v141_v19 }
  0xf8   :  { %229 = shalt.err (!%p226_p12)
}
  0xf9   :  { %s230_s3 = scalar_lea.hbm %s325_s4, 256 }
  0xfa   :  { %p231_p13 = scmp.ne.s32.totalorder %s325_s4, %s230_s3  ;;  %p234_p0 = scmp.lt.u32.totalorder %s230_s3, %s325_s4 }
  0xfc   :  { %p236_p1 = pnand %p234_p0, %p231_p13 }
  0xfe   :  { %239 = shalt.err (!%p236_p1)
}
  0xff   :  { %156 = dma.vmem_to_hbm [thread:$0]  %s151_s2, 256, %s325_s4, [#allocation4], %s245_s25, %s245_s25, %s246_s26  }
 0x100   :  { %242 = dma.done.wait [#allocation4], 256  }
 0x101   :  { %243 = vsyncadd [#allocation4], 4294967040 }
 0x102   :  { %160 = vsyncpa [#allocation3], 1 }
 0x103   :  { %161 = vsyncpa [#allocation4], 1 }

</bundles_post_ra>
